<compile_context>
chip_gen: v5e
topology: v5e:2x2
jax: 0.10.0
libtpu: 0.0.40
codegen_flags: <defaults>
</compile_context>

<pallas_src>
import jax
import jax.numpy as jnp
from jax.experimental import pallas as pl
from jax.experimental.pallas import tpu as pltpu

IN_FEATURES = 2    # RBFManualCentroid(2, 3, ...)
NUM_CENTRES = 3
REP_DIM = 1        # fc = nn.Linear(3, 1)


def rbf_net_kernel(x_ref, c_ref, inv_s2_ref, w_ref, b_ref, out_ref):
    """Fused gaussian-RBF + Linear forward on one (2, TILE_N) tile.

    x_ref     : (2, TILE_N) VMEM float32   inputs, features on sublanes
    c_ref     : (6,)        SMEM float32   RBF centres, flattened (k, d) row-major
    inv_s2_ref: (3,)        SMEM float32   exp(-2 * log_sigma[k])
    w_ref     : (3,)        SMEM float32   fc.weight flattened (rep_dim == 1)
    b_ref     : (1,)        SMEM float32   fc.bias
    out_ref   : (1, TILE_N) VMEM float32
    """
    x0 = x_ref[0:1, :]                      # (1, TILE_N) feature 0
    x1 = x_ref[1:2, :]                      # (1, TILE_N) feature 1

    acc = jnp.zeros(x0.shape, jnp.float32)  # (1, TILE_N) fc accumulator
    for k in range(NUM_CENTRES):            # static unroll, K = 3
        d0 = x0 - c_ref[2 * k]              # scalar broadcast from SMEM
        d1 = x1 - c_ref[2 * k + 1]
        d2 = d0 * d0 + d1 * d1              # squared distance, pure VALU
        phi_k = jnp.exp(-d2 * inv_s2_ref[k])  # gaussian basis (single EUP op)
        acc = acc + phi_k * w_ref[k]        # fc contribution of unit k

    out_ref[...] = acc + b_ref[0]           # one lane-dense store per tile


def rbf_net_forward(x, centres, log_sigmas, fc_w, fc_b, *, tile_n=4096):
    """Forward pass. x: (N, 2) -> (N, 1)."""
    x = x.astype(jnp.float32)
    n = x.shape[0]

    # Pad N up to a lane multiple, pick a tile, then round N up to the tile.
    n_pad = max(128, ((n + 127) // 128) * 128)
    tile = min(tile_n, n_pad)
    n_pad = ((n_pad + tile - 1) // tile) * tile
    grid = (n_pad // tile,)

    # Lane-dense transposed input (features on sublanes, batch on lanes).
    x_t = jnp.zeros((IN_FEATURES, n_pad), jnp.float32).at[:, :n].set(x.T)

    # Per-centre scalars (hoisted out of the kernel body).
    c_flat = centres.reshape(-1).astype(jnp.float32)              # (6,)
    inv_sigma2 = jnp.exp(-2.0 * log_sigmas).astype(jnp.float32)   # (3,)
    fc_w = fc_w.reshape(-1).astype(jnp.float32)                   # (3,)
    fc_b = fc_b.reshape(-1).astype(jnp.float32)                   # (1,)

    out_t = pl.pallas_call(
        rbf_net_kernel,
        out_shape=jax.ShapeDtypeStruct((1, n_pad), jnp.float32),
        grid=grid,
        in_specs=[
            pl.BlockSpec((IN_FEATURES, tile), lambda i: (0, i)),
            pl.BlockSpec(memory_space=pltpu.MemorySpace.SMEM),
            pl.BlockSpec(memory_space=pltpu.MemorySpace.SMEM),
            pl.BlockSpec(memory_space=pltpu.MemorySpace.SMEM),
            pl.BlockSpec(memory_space=pltpu.MemorySpace.SMEM),
        ],
        out_specs=pl.BlockSpec((1, tile), lambda i: (0, i)),
        compiler_params=pltpu.CompilerParams(
            dimension_semantics=("parallel",)),
    )(x_t, c_flat, inv_sigma2, fc_w, fc_b)

    # Back to the PyTorch (N, 1) layout, dropping padded lanes.
    return out_t[0, :n][:, None]


def rbf_net_reference(x, centres, log_sigmas, fc_w, fc_b):
    """Pure-JAX reference matching the PyTorch forward."""
    diff = x[:, None, :] - centres[None, :, :]               # (N, K, D)
    dist = jnp.sqrt(jnp.sum(diff * diff, axis=-1))           # (N, K)
    dist = dist / jnp.exp(log_sigmas)[None, :]               # (N, K)
    phi = jnp.exp(-(dist ** 2))                              # gaussian
    return phi @ fc_w[:, None] + fc_b[None, :]               # (N, 1)


if __name__ == "__main__":
    key = jax.random.PRNGKey(0)
    k_x, k_c, k_s, k_w, k_b = jax.random.split(key, 5)

    # Deterministically-initialized parameters (synthetic).
    centres = jax.random.normal(k_c, (NUM_CENTRES, IN_FEATURES), dtype=jnp.float32)
    log_sigmas = 0.1 * jax.random.normal(k_s, (NUM_CENTRES,), dtype=jnp.float32)
    fc_w = jax.random.normal(k_w, (NUM_CENTRES,), dtype=jnp.float32) * 0.5   # Linear(3,1).weight flattened
    fc_b = jax.random.normal(k_b, (1,), dtype=jnp.float32) * 0.1             # Linear(3,1).bias

    # Small demo batch (single tile, padded to 128 lanes).
    N = 8
    x_small = jax.random.normal(k_x, (N, IN_FEATURES), dtype=jnp.float32)
    out_small = jax.block_until_ready(
        rbf_net_forward(x_small, centres, log_sigmas, fc_w, fc_b))
    ref_small = rbf_net_reference(x_small, centres, log_sigmas, fc_w, fc_b)
    assert out_small.shape == (N, REP_DIM), out_small.shape
    assert jnp.allclose(out_small, ref_small, atol=1e-5, rtol=1e-5), (out_small, ref_small)

    # Multi-tile path (exercises grid pipelining + padded last tile).
    N2 = 300
    x_big = jax.random.normal(k_x, (N2, IN_FEATURES), dtype=jnp.float32)
    out_big = jax.block_until_ready(
        rbf_net_forward(x_big, centres, log_sigmas, fc_w, fc_b, tile_n=128))
    ref_big = rbf_net_reference(x_big, centres, log_sigmas, fc_w, fc_b)
    assert out_big.shape == (N2, REP_DIM), out_big.shape
    assert jnp.allclose(out_big, ref_big, atol=1e-5, rtol=1e-5), (out_big, ref_big)

    print("KERNEL_OK")
</pallas_src>

<mosaic_0001>
module attributes {stable_mosaic.version = 11 : i64} {
  func.func @rbf_net_kernel(%arg0: i32, %arg1: memref<2x128xf32, #tpu.memory_space<vmem>>, %arg2: memref<6xf32, #tpu.memory_space<smem>>, %arg3: memref<3xf32, #tpu.memory_space<smem>>, %arg4: memref<3xf32, #tpu.memory_space<smem>>, %arg5: memref<1xf32, #tpu.memory_space<smem>>, %arg6: memref<1x128xf32, #tpu.memory_space<vmem>>) attributes {dimension_semantics = [#tpu.dimension_semantics<parallel>], iteration_bounds = array<i64: 1>, scalar_prefetch = 0 : i64, scratch_operands = 0 : i64, tpu.core_type = #tpu.core_type<tc>, window_params = [{transform_indices = @transform_0, window_bounds = array<i64: 2, 128>}, {transform_indices = @transform_1, window_bounds = array<i64: 6>}, {transform_indices = @transform_2, window_bounds = array<i64: 3>}, {transform_indices = @transform_3, window_bounds = array<i64: 3>}, {transform_indices = @transform_4, window_bounds = array<i64: 1>}, {transform_indices = @transform_5, window_bounds = array<i64: 1, 128>}]} {
    %c0 = arith.constant 0 : index
    %c0_0 = arith.constant 0 : index
    %0 = vector.load %arg1[%c0, %c0_0] : memref<2x128xf32, #tpu.memory_space<vmem>>, vector<1x128xf32>
    %c1 = arith.constant 1 : index
    %c0_1 = arith.constant 0 : index
    %1 = vector.load %arg1[%c1, %c0_1] : memref<2x128xf32, #tpu.memory_space<vmem>>, vector<1x128xf32>
    %cst = arith.constant 0.000000e+00 : f32
    %2 = vector.broadcast %cst : f32 to vector<1x128xf32>
    %c0_2 = arith.constant 0 : index
    %3 = memref.load %arg2[%c0_2] : memref<6xf32, #tpu.memory_space<smem>>
    %4 = vector.broadcast %3 : f32 to vector<1x128xf32>
    %5 = arith.subf %0, %4 : vector<1x128xf32>
    %c1_3 = arith.constant 1 : index
    %6 = memref.load %arg2[%c1_3] : memref<6xf32, #tpu.memory_space<smem>>
    %7 = vector.broadcast %6 : f32 to vector<1x128xf32>
    %8 = arith.subf %1, %7 : vector<1x128xf32>
    %9 = arith.mulf %5, %5 : vector<1x128xf32>
    %10 = arith.mulf %8, %8 : vector<1x128xf32>
    %11 = arith.addf %9, %10 : vector<1x128xf32>
    %cst_4 = arith.constant 0.000000e+00 : f32
    %12 = vector.broadcast %cst_4 : f32 to vector<1x128xf32>
    %13 = arith.subf %12, %11 : vector<1x128xf32>
    %c0_5 = arith.constant 0 : index
    %14 = memref.load %arg3[%c0_5] : memref<3xf32, #tpu.memory_space<smem>>
    %15 = vector.broadcast %14 : f32 to vector<1x128xf32>
    %16 = arith.mulf %13, %15 : vector<1x128xf32>
    %17 = math.exp %16 : vector<1x128xf32>
    %c0_6 = arith.constant 0 : index
    %18 = memref.load %arg4[%c0_6] : memref<3xf32, #tpu.memory_space<smem>>
    %19 = vector.broadcast %18 : f32 to vector<1x128xf32>
    %20 = arith.mulf %17, %19 : vector<1x128xf32>
    %21 = arith.addf %2, %20 : vector<1x128xf32>
    %c2 = arith.constant 2 : index
    %22 = memref.load %arg2[%c2] : memref<6xf32, #tpu.memory_space<smem>>
    %23 = vector.broadcast %22 : f32 to vector<1x128xf32>
    %24 = arith.subf %0, %23 : vector<1x128xf32>
    %c3 = arith.constant 3 : index
    %25 = memref.load %arg2[%c3] : memref<6xf32, #tpu.memory_space<smem>>
    %26 = vector.broadcast %25 : f32 to vector<1x128xf32>
    %27 = arith.subf %1, %26 : vector<1x128xf32>
    %28 = arith.mulf %24, %24 : vector<1x128xf32>
    %29 = arith.mulf %27, %27 : vector<1x128xf32>
    %30 = arith.addf %28, %29 : vector<1x128xf32>
    %cst_7 = arith.constant 0.000000e+00 : f32
    %31 = vector.broadcast %cst_7 : f32 to vector<1x128xf32>
    %32 = arith.subf %31, %30 : vector<1x128xf32>
    %c1_8 = arith.constant 1 : index
    %33 = memref.load %arg3[%c1_8] : memref<3xf32, #tpu.memory_space<smem>>
    %34 = vector.broadcast %33 : f32 to vector<1x128xf32>
    %35 = arith.mulf %32, %34 : vector<1x128xf32>
    %36 = math.exp %35 : vector<1x128xf32>
    %c1_9 = arith.constant 1 : index
    %37 = memref.load %arg4[%c1_9] : memref<3xf32, #tpu.memory_space<smem>>
    %38 = vector.broadcast %37 : f32 to vector<1x128xf32>
    %39 = arith.mulf %36, %38 : vector<1x128xf32>
    %40 = arith.addf %21, %39 : vector<1x128xf32>
    %c4 = arith.constant 4 : index
    %41 = memref.load %arg2[%c4] : memref<6xf32, #tpu.memory_space<smem>>
    %42 = vector.broadcast %41 : f32 to vector<1x128xf32>
    %43 = arith.subf %0, %42 : vector<1x128xf32>
    %c5 = arith.constant 5 : index
    %44 = memref.load %arg2[%c5] : memref<6xf32, #tpu.memory_space<smem>>
    %45 = vector.broadcast %44 : f32 to vector<1x128xf32>
    %46 = arith.subf %1, %45 : vector<1x128xf32>
    %47 = arith.mulf %43, %43 : vector<1x128xf32>
    %48 = arith.mulf %46, %46 : vector<1x128xf32>
    %49 = arith.addf %47, %48 : vector<1x128xf32>
    %cst_10 = arith.constant 0.000000e+00 : f32
    %50 = vector.broadcast %cst_10 : f32 to vector<1x128xf32>
    %51 = arith.subf %50, %49 : vector<1x128xf32>
    %c2_11 = arith.constant 2 : index
    %52 = memref.load %arg3[%c2_11] : memref<3xf32, #tpu.memory_space<smem>>
    %53 = vector.broadcast %52 : f32 to vector<1x128xf32>
    %54 = arith.mulf %51, %53 : vector<1x128xf32>
    %55 = math.exp %54 : vector<1x128xf32>
    %c2_12 = arith.constant 2 : index
    %56 = memref.load %arg4[%c2_12] : memref<3xf32, #tpu.memory_space<smem>>
    %57 = vector.broadcast %56 : f32 to vector<1x128xf32>
    %58 = arith.mulf %55, %57 : vector<1x128xf32>
    %59 = arith.addf %40, %58 : vector<1x128xf32>
    %c0_13 = arith.constant 0 : index
    %60 = memref.load %arg5[%c0_13] : memref<1xf32, #tpu.memory_space<smem>>
    %61 = vector.broadcast %60 : f32 to vector<1x128xf32>
    %62 = arith.addf %59, %61 : vector<1x128xf32>
    %c0_14 = arith.constant 0 : index
    %c0_15 = arith.constant 0 : index
    %63 = vector.load %arg6[%c0_14, %c0_15] : memref<1x128xf32, #tpu.memory_space<vmem>>, vector<1x128xf32>
    tpu.vector_store %arg6[%c0_14, %c0_15], %62 {strides = array<i32>} : memref<1x128xf32, #tpu.memory_space<vmem>>, vector<1x128xf32>,
    return
  }
  func.func @transform_0(%arg0: i32) -> (i32, i32) {
    %c0_i32 = arith.constant 0 : i32
    %c0_i32_0 = arith.constant 0 : i32
    return %c0_i32, %arg0 : i32, i32
  }
  func.func @transform_1(%arg0: i32) -> i32 {
    %c0_i32 = arith.constant 0 : i32
    %c0_i32_0 = arith.constant 0 : i32
    return %c0_i32 : i32
  }
  func.func @transform_2(%arg0: i32) -> i32 {
    %c0_i32 = arith.constant 0 : i32
    %c0_i32_0 = arith.constant 0 : i32
    return %c0_i32 : i32
  }
  func.func @transform_3(%arg0: i32) -> i32 {
    %c0_i32 = arith.constant 0 : i32
    %c0_i32_0 = arith.constant 0 : i32
    return %c0_i32 : i32
  }
  func.func @transform_4(%arg0: i32) -> i32 {
    %c0_i32 = arith.constant 0 : i32
    %c0_i32_0 = arith.constant 0 : i32
    return %c0_i32 : i32
  }
  func.func @transform_5(%arg0: i32) -> (i32, i32) {
    %c0_i32 = arith.constant 0 : i32
    %c0_i32_0 = arith.constant 0 : i32
    return %c0_i32, %arg0 : i32, i32
  }
}

</mosaic_0001>

<bundles_post_ra>
// kernel: tpu_custom_call.1
= control target key start
LH: loop header
LB: loop body
LE: loop exit
PB: predicated region body
PF: predicated region fallthrough
CT: control target
= control target key end

     0   :  { %11 = vsyncpa [#allocation5], 0  ;;  %s283_s0 = inlined_call_operand.vmem [shape: f32[2,128], index: 0, kind: input, shape index: {}]   ;;  %s284_s1 = inlined_call_operand.hbm [shape: f32[6], index: 1, kind: input, shape index: {}]   ;;  %s285_s2 = inlined_call_operand.vmem [shape: f32[3], index: 2, kind: input, shape index: {}]   ;;  %s286_s3 = inlined_call_operand.vmem [shape: f32[3], index: 3, kind: input, shape index: {}]   ;;  %s287_s4 = inlined_call_operand.<no memory space> [shape: f32[1], index: 4, kind: input, shape index: {}]   ;;  %s288_s5 = inlined_call_operand.hbm [shape: f32[1,128], index: 5, kind: output, shape index: {}]  }
   0x1   :  { %12 = vsyncpa [#allocation6], 0 }
   0x2   :  { %13 = vsyncpa [#allocation9], 0 }
   0x3   :  { %14 = vsyncpa [#allocation4], 0  ;;  %s22_s20 = sshll.u32 %s284_s1, 4  ;;  %s31_s23 = sshll.u32 %s285_s2, 4  ;;  %s23_s20 = int_to_ptr.hbm [resolvable:$true] %s22_s20  ;;  %s32_s23 = int_to_ptr.vmem [resolvable:$true] %s31_s23 }
   0x4   :  { %s228_s24 = smov [#allocation3]   ;;  %s229_s25 = smov [#allocation7]  }
   0x5   :  { %25 = dma.hbm_to_smem %s23_s20, 16, %s228_s24, [#allocation5]  }
   0x6   :  { %34 = dma.vmem_to_smem %s32_s23, 16, %s229_s25, [#allocation6]  }
   0x7   :  { %s40_s28 = sshll.u32 %s286_s3, 4  ;;  %s230_s29 = smov [#allocation8]   ;;  %s41_s28 = int_to_ptr.vmem [resolvable:$true] %s40_s28 }
   0x8   :  { %43 = dma.vmem_to_smem %s41_s28, 16, %s230_s29, [#allocation9]  }
   0x9   :  { %220 = dma.done.wait [#allocation5], 16  }
   0xa   :  { %221 = vsyncadd [#allocation5], 4294967280 }
   0xb   :  { %222 = dma.done.wait [#allocation6], 16  }
   0xc   :  { %223 = vsyncadd [#allocation6], 4294967280 }
   0xd   :  { %224 = dma.done.wait [#allocation9], 16  }
   0xe   :  { %225 = vsyncadd [#allocation9], 4294967280 }
   0xf   :  { %58 = sfence }
  0x10   :  { %s61_s1 = sld [smem:[#allocation3]]  ;;  %v59_v0 = vld [vmem:[%s283_s0] sm:$0x1]  ;;  %v60_v1 = vld [vmem:[%s283_s0 + $0x1] sm:$0x1]  ;;  %v119_v45 = vstv %s287_s4  ;;  %s231_s19 = smov [#allocation10]  }
  0x11   :  { %s141_s2 = sld [smem:[#allocation3 + $0x1]]  ;;  %s127_s20 = sshll.u32 %s231_s19, 4  ;;  %s128_s20 = int_to_ptr.vmem [resolvable:$true] %s127_s20 }
  0x12   :  { %s71_s30 = sld [smem:[#allocation7]]  ;;  %s129_s23 = sshll.u32 %s288_s5, 4  ;;  %s130_s23 = int_to_ptr.hbm [resolvable:$true] %s129_s23 }
  0x13   :  { %s142_s8 = sld [smem:[#allocation3 + $0x2]] }
  0x14   :  { %s143_s10 = sld [smem:[#allocation3 + $0x3]] }
  0x15   :  { %s144_s11 = sld [smem:[#allocation7 + $0x1]] }
  0x16   :  { %v62_v2 = vstv %s61_s1  ;;  %s146_s12 = sld [smem:[#allocation3 + $0x4]] }
  0x17   :  { %v63_v3 = vsub.f32 %v59_v0, %v62_v2  ;;  %v65_v4 = vstv %s141_s2  ;;  %s147_s13 = sld [smem:[#allocation3 + $0x5]] }
  0x18   :  { %v66_v5 = vsub.f32 %v60_v1, %v65_v4  ;;  %v72_v13 = vstv %s71_s30  ;;  %s148_s14 = sld [smem:[#allocation7 + $0x2]] }
  0x19   :  { %v67_v6 = vmul.f32 %v63_v3, %v63_v3  ;;  %v81_v8 = vstv %s142_s8  ;;  %s76_s0 = sld [smem:[#allocation8]] }
  0x1a   :  { %v68_v7 = vmul.f32 %v66_v5, %v66_v5  ;;  %v82_v9 = vsub.f32 %v59_v0, %v81_v8  ;;  %v84_v10 = vstv %s143_s10  ;;  %s145_s15 = sld [smem:[#allocation8 + $0x1]] }
  0x1b   :  { %v85_v12 = vsub.f32 %v60_v1, %v84_v10  ;;  %v91_v23 = vstv %s144_s11  ;;  %s149_s16 = sld [smem:[#allocation8 + $0x2]] }
  0x1c   :  { %v69_v11 = vadd.f32 %v68_v7, %v67_v6  ;;  %v86_v14 = vmul.f32 %v82_v9, %v82_v9  ;;  %v100_v17 = vstv %s146_s12 }
  0x1d   :  { %v87_v16 = vmul.f32 %v85_v12, %v85_v12  ;;  %v101_v18 = vsub.f32 %v59_v0, %v100_v17  ;;  %v103_v19 = vstv %s147_s13 }
  0x1e   :  { %v70_v15 = vsub.f32 0.0, %v69_v11  ;;  %v104_v22 = vsub.f32 %v60_v1, %v103_v19  ;;  %v110_v30 = vstv %s148_s14 }
  0x1f   :  { %v88_v21 = vadd.f32 %v87_v16, %v86_v14  ;;  %v105_v24 = vmul.f32 %v101_v18, %v101_v18  ;;  %v77_v35 = vstv %s76_s0 }
  0x20   :  { %v73_v20 = vmul.f32 %v72_v13, %v70_v15  ;;  %v106_v27 = vmul.f32 %v104_v22, %v104_v22  ;;  %v96_v37 = vstv %s145_s15 }
  0x21   :  { %v89_v26 = vsub.f32 0.0, %v88_v21  ;;  %v115_v41 = vstv %s149_s16 }
  0x22   :  { %v74_v25 = vmul.f32 1.442695, %v73_v20  ;;  %v107_v29 = vadd.f32 %v106_v27, %v105_v24 }
  0x23   :  { %v92_v28 = vmul.f32 %v91_v23, %v89_v26 }
  0x24   :  { %154 = vpow2.f32 %v74_v25  ;;  %v108_v32 = vsub.f32 0.0, %v107_v29 }
  0x25   :  { %v93_v31 = vmul.f32 1.442695, %v92_v28 }
  0x26   :  { %v111_v33 = vmul.f32 %v110_v30, %v108_v32 }
  0x27   :  { %156 = vpow2.f32 %v93_v31 }
  0x28   :  { %v112_v36 = vmul.f32 1.442695, %v111_v33 }
  0x2a   :  { %v155_v34 = vpop.eup %154  ;;  %158 = vpow2.f32 %v112_v36 }
  0x2b   :  { %v78_v38 = vmul.f32 %v155_v34, %v77_v35 }
  0x2d   :  { %v157_v39 = vpop.eup %156 }
  0x2e   :  { %v97_v40 = vmul.f32 %v157_v39, %v96_v37 }
  0x30   :  { %v98_v42 = vadd.f32 %v97_v40, %v78_v38  ;;  %v159_v43 = vpop.eup %158 }
  0x31   :  { %v116_v44 = vmul.f32 %v159_v43, %v115_v41 }
  0x33   :  { %v117_v46 = vadd.f32 %v116_v44, %v98_v42 }
  0x35   :  { %v120_v47 = vadd.f32 %v119_v45, %v117_v46 }
  0x37   :  { %121 = vst [vmem:[#allocation10] sm:$0x1] %v120_v47 }
  0x38   :  { %132 = dma.vmem_to_hbm [thread:$0]  %s128_s20, 16, %s130_s23, [#allocation4]  }
  0x39   :  { %226 = dma.done.wait [#allocation4], 16  }
  0x3a   :  { %227 = vsyncadd [#allocation4], 4294967280 }
  0x3b   :  { %137 = vsyncpa [#allocation4], 1 }
  0x3c   :  { %138 = vsyncpa [#allocation5], 1 }
  0x3d   :  { %139 = vsyncpa [#allocation6], 1 }
  0x3e   :  { %140 = vsyncpa [#allocation9], 1 }

</bundles_post_ra>
